<compile_context>
chip_gen: v7x
topology: tpu7x:2x2x1
jax: 0.10.0
libtpu: 0.0.40
codegen_flags: <defaults>
</compile_context>

<pallas_src>
import jax
import jax.numpy as jnp
from jax.experimental import pallas as pl
from jax.experimental.pallas import tpu as pltpu


def _round_up(n, m):
    return ((n + m - 1) // m) * m


def fraud_mlp_kernel(x_ref, w1_ref, b1_ref, w2_ref, b2_ref, w3_ref, b3_ref, o_ref):
    # Cast the f32 input tile to bf16 in-kernel (VPU pass; avoids a wrapper-side
    # HBM round trip over x).
    x = x_ref[...].astype(jnp.bfloat16)

    # fc1 + ReLU  (bf16 MXU, f32 accumulate; bias/ReLU in f32)
    h1 = jnp.dot(x, w1_ref[...], preferred_element_type=jnp.float32)
    h1 = jnp.maximum(h1 + b1_ref[...], 0.0)

    # fc2 + ReLU
    h2 = jnp.dot(h1.astype(jnp.bfloat16), w2_ref[...],
                 preferred_element_type=jnp.float32)
    h2 = jnp.maximum(h2 + b2_ref[...], 0.0)

    # fc3 (single real output column) + Sigmoid
    logits = jnp.dot(h2.astype(jnp.bfloat16), w3_ref[...],
                     preferred_element_type=jnp.float32) + b3_ref[...]
    o_ref[...] = jax.nn.sigmoid(logits)


def fraud_detection_forward(x, params, *, block_batch=4096):
    """x: (B, input_size) float32. params: dict of f32 weights/biases.

    Returns (B, 1) float32 sigmoid scores, matching the PyTorch forward.
    """
    # bf16 weights for the MXU (tiny, cast once in the wrapper); f32 biases.
    w1 = params["w1"].astype(jnp.bfloat16)
    b1 = params["b1"].astype(jnp.float32)
    w2 = params["w2"].astype(jnp.bfloat16)
    b2 = params["b2"].astype(jnp.float32)
    w3 = params["w3"].astype(jnp.bfloat16)
    b3 = params["b3"].astype(jnp.float32)

    B, F = x.shape
    H1 = w1.shape[1]   # 128
    H2 = w2.shape[1]   # 64

    # Batch tile: multiple of 8 (sublane); capped at ~half the batch so the grid
    # has >= 2 steps (keeps both TensorCores busy on v7x) and at block_batch so
    # the double-buffered working set stays well under the 32 MiB scoped VMEM.
    half = _round_up(max(1, (B + 1) // 2), 8)
    TB = max(8, min(block_batch, half))
    TB = min(TB, _round_up(B, 8))
    Bp = _round_up(B, TB)
    if Bp != B:
        # Zero rows: harmless (sliced off below), keeps the grid divisible.
        x = jnp.pad(x, ((0, Bp - B), (0, 0)))

    flops = 2 * Bp * (F * H1 + H1 * H2 + H2 * 1)
    bytes_accessed = (Bp * F * 4 + Bp * 4                     # x read, out write
                      + (w1.size + w2.size + w3.size) * 2     # bf16 weights
                      + (b1.size + b2.size + b3.size) * 4)    # f32 biases

    out = pl.pallas_call(
        fraud_mlp_kernel,
        out_shape=jax.ShapeDtypeStruct((Bp, 1), jnp.float32),
        grid_spec=pltpu.PrefetchScalarGridSpec(
            num_scalar_prefetch=0,
            grid=(Bp // TB,),
            in_specs=[
                pl.BlockSpec((TB, F), lambda i: (i, 0)),    # x tile (pipelined, f32)
                pl.BlockSpec((F, H1), lambda i: (0, 0)),    # w1 (resident)
                pl.BlockSpec((1, H1), lambda i: (0, 0)),    # b1
                pl.BlockSpec((H1, H2), lambda i: (0, 0)),   # w2
                pl.BlockSpec((1, H2), lambda i: (0, 0)),    # b2
                pl.BlockSpec((H2, 1), lambda i: (0, 0)),    # w3 (single column)
                pl.BlockSpec((1, 1), lambda i: (0, 0)),     # b3
            ],
            out_specs=pl.BlockSpec((TB, 1), lambda i: (i, 0)),
        ),
        compiler_params=pltpu.CompilerParams(
            # Batch axis is embarrassingly parallel -> megacore on v7x.
            dimension_semantics=("parallel",),
            # Safe ceiling on all generations (v7x physical VMEM is 64 MiB).
            vmem_limit_bytes=32 * 1024 * 1024,
        ),
        cost_estimate=pl.CostEstimate(
            flops=flops,
            transcendentals=Bp,            # one exp per sigmoid
            bytes_accessed=bytes_accessed,
        ),
    )(x, w1, b1, w2, b2, w3, b3)

    # Drop padding rows.
    return out[:B, :]


def init_params(input_size, key):
    """Deterministic synthetic parameters matching FraudDetectionModel shapes."""
    k1, k2, k3, k4, k5, k6 = jax.random.split(key, 6)

    # nn.Linear default init range ~ U(-1/sqrt(fan_in), 1/sqrt(fan_in))
    def lin(kw, kb, fan_in, fan_out):
        bound = 1.0 / jnp.sqrt(fan_in)
        w = jax.random.uniform(kw, (fan_in, fan_out), jnp.float32, -bound, bound)
        b = jax.random.uniform(kb, (1, fan_out), jnp.float32, -bound, bound)
        return w, b

    w1, b1 = lin(k1, k2, input_size, 128)
    w2, b2 = lin(k3, k4, 128, 64)
    w3, b3 = lin(k5, k6, 64, 1)
    return {"w1": w1, "b1": b1, "w2": w2, "b2": b2, "w3": w3, "b3": b3}


def _reference_bf16(x, params):
    """Same bf16-input / f32-accumulate math in plain JAX (tight tolerance)."""
    xb = x.astype(jnp.bfloat16)
    w1b = params["w1"].astype(jnp.bfloat16)
    w2b = params["w2"].astype(jnp.bfloat16)
    w3b = params["w3"].astype(jnp.bfloat16)
    h1 = jnp.maximum(
        jnp.dot(xb, w1b, preferred_element_type=jnp.float32) + params["b1"], 0.0)
    h2 = jnp.maximum(
        jnp.dot(h1.astype(jnp.bfloat16), w2b,
                preferred_element_type=jnp.float32) + params["b2"], 0.0)
    return jax.nn.sigmoid(
        jnp.dot(h2.astype(jnp.bfloat16), w3b,
                preferred_element_type=jnp.float32) + params["b3"])


def _reference_f32(x, params):
    """Full-f32 PyTorch-equivalent math (loose tolerance; bf16 quantization)."""
    h1 = jnp.maximum(x @ params["w1"] + params["b1"], 0.0)
    h2 = jnp.maximum(h1 @ params["w2"] + params["b2"], 0.0)
    return jax.nn.sigmoid(h2 @ params["w3"] + params["b3"])


if __name__ == "__main__":
    key = jax.random.PRNGKey(0)
    kx, kx2, kp = jax.random.split(key, 3)

    input_size = 32
    params = init_params(input_size, kp)

    # --- Test 1: tiny batch, single grid step ---------------------------------
    batch = 8
    x = jax.random.normal(kx, (batch, input_size), dtype=jnp.float32)
    out = jax.block_until_ready(fraud_detection_forward(x, params))
    assert out.shape == (batch, 1)
    assert jnp.allclose(out, _reference_bf16(x, params), atol=1e-3, rtol=1e-3)
    assert jnp.allclose(out, _reference_f32(x, params), atol=3e-2, rtol=3e-2)

    # --- Test 2: non-multiple batch -> padding + 2-step (megacore) grid -------
    batch2 = 24
    x2 = jax.random.normal(kx2, (batch2, input_size), dtype=jnp.float32)
    out2 = jax.block_until_ready(fraud_detection_forward(x2, params))
    assert out2.shape == (batch2, 1)
    assert jnp.allclose(out2, _reference_bf16(x2, params), atol=1e-3, rtol=1e-3)
    assert jnp.allclose(out2, _reference_f32(x2, params), atol=3e-2, rtol=3e-2)

    print("KERNEL_OK")
</pallas_src>

<mosaic_0001>
module attributes {stable_mosaic.version = 11 : i64} {
  func.func @fraud_mlp_kernel(%arg0: i32, %arg1: memref<8x32xf32, #tpu.memory_space<vmem>>, %arg2: memref<32x128xbf16, #tpu.memory_space<vmem>>, %arg3: memref<1x128xf32, #tpu.memory_space<vmem>>, %arg4: memref<128x64xbf16, #tpu.memory_space<vmem>>, %arg5: memref<1x64xf32, #tpu.memory_space<vmem>>, %arg6: memref<64x1xbf16, #tpu.memory_space<vmem>>, %arg7: memref<1x1xf32, #tpu.memory_space<vmem>>, %arg8: memref<8x1xf32, #tpu.memory_space<vmem>>) attributes {dimension_semantics = [#tpu.dimension_semantics<parallel>], iteration_bounds = array<i64: 1>, scalar_prefetch = 0 : i64, scratch_operands = 0 : i64, tpu.core_type = #tpu.core_type<tc>, window_params = [{transform_indices = @transform_0, window_bounds = array<i64: 8, 32>}, {pipeline_mode = #tpu.pipeline_mode<synchronous>, transform_indices = @transform_1, window_bounds = array<i64: 32, 128>}, {pipeline_mode = #tpu.pipeline_mode<synchronous>, transform_indices = @transform_2, window_bounds = array<i64: 1, 128>}, {pipeline_mode = #tpu.pipeline_mode<synchronous>, transform_indices = @transform_3, window_bounds = array<i64: 128, 64>}, {pipeline_mode = #tpu.pipeline_mode<synchronous>, transform_indices = @transform_4, window_bounds = array<i64: 1, 64>}, {pipeline_mode = #tpu.pipeline_mode<synchronous>, transform_indices = @transform_5, window_bounds = array<i64: 64, 1>}, {pipeline_mode = #tpu.pipeline_mode<synchronous>, transform_indices = @transform_6, window_bounds = array<i64: 1, 1>}, {transform_indices = @transform_7, window_bounds = array<i64: 8, 1>}]} {
    %c0 = arith.constant 0 : index
    %c0_0 = arith.constant 0 : index
    %0 = vector.load %arg1[%c0, %c0_0] : memref<8x32xf32, #tpu.memory_space<vmem>>, vector<8x32xf32>
    %1 = arith.truncf %0 : vector<8x32xf32> to vector<8x32xbf16>
    %c0_1 = arith.constant 0 : index
    %c0_2 = arith.constant 0 : index
    %2 = vector.load %arg2[%c0_1, %c0_2] : memref<32x128xbf16, #tpu.memory_space<vmem>>, vector<32x128xbf16>
    %cst = arith.constant dense<0.000000e+00> : vector<8x128xf32>
    %3 = tpu.matmul %1, %2, %cst {dimension_numbers = #tpu.dot_dimension_numbers<[1], [0], [0], [1], [0, 0, 1, 1], [], []>} : vector<8x32xbf16>, vector<32x128xbf16>, vector<8x128xf32> -> vector<8x128xf32>
    %c0_3 = arith.constant 0 : index
    %c0_4 = arith.constant 0 : index
    %4 = vector.load %arg3[%c0_3, %c0_4] : memref<1x128xf32, #tpu.memory_space<vmem>>, vector<1x128xf32>
    %5 = vector.broadcast %4 : vector<1x128xf32> to vector<8x128xf32>
    %6 = arith.addf %3, %5 : vector<8x128xf32>
    %cst_5 = arith.constant 0.000000e+00 : f32
    %7 = vector.broadcast %cst_5 : f32 to vector<8x128xf32>
    %8 = arith.maximumf %6, %7 : vector<8x128xf32>
    %9 = arith.truncf %8 : vector<8x128xf32> to vector<8x128xbf16>
    %c0_6 = arith.constant 0 : index
    %c0_7 = arith.constant 0 : index
    %10 = vector.load %arg4[%c0_6, %c0_7] : memref<128x64xbf16, #tpu.memory_space<vmem>>, vector<128x64xbf16>
    %cst_8 = arith.constant dense<0.000000e+00> : vector<8x64xf32>
    %11 = tpu.matmul %9, %10, %cst_8 {dimension_numbers = #tpu.dot_dimension_numbers<[1], [0], [0], [1], [0, 0, 1, 1], [], []>} : vector<8x128xbf16>, vector<128x64xbf16>, vector<8x64xf32> -> vector<8x64xf32>
    %c0_9 = arith.constant 0 : index
    %c0_10 = arith.constant 0 : index
    %12 = vector.load %arg5[%c0_9, %c0_10] : memref<1x64xf32, #tpu.memory_space<vmem>>, vector<1x64xf32>
    %13 = vector.broadcast %12 : vector<1x64xf32> to vector<8x64xf32>
    %14 = arith.addf %11, %13 : vector<8x64xf32>
    %cst_11 = arith.constant 0.000000e+00 : f32
    %15 = vector.broadcast %cst_11 : f32 to vector<8x64xf32>
    %16 = arith.maximumf %14, %15 : vector<8x64xf32>
    %17 = arith.truncf %16 : vector<8x64xf32> to vector<8x64xbf16>
    %c0_12 = arith.constant 0 : index
    %c0_13 = arith.constant 0 : index
    %18 = vector.load %arg6[%c0_12, %c0_13] : memref<64x1xbf16, #tpu.memory_space<vmem>>, vector<64x1xbf16>
    %cst_14 = arith.constant dense<0.000000e+00> : vector<8x1xf32>
    %19 = tpu.matmul %17, %18, %cst_14 {dimension_numbers = #tpu.dot_dimension_numbers<[1], [0], [0], [1], [0, 0, 1, 1], [], []>} : vector<8x64xbf16>, vector<64x1xbf16>, vector<8x1xf32> -> vector<8x1xf32>
    %c0_15 = arith.constant 0 : index
    %c0_16 = arith.constant 0 : index
    %20 = vector.load %arg7[%c0_15, %c0_16] : memref<1x1xf32, #tpu.memory_space<vmem>>, vector<1x1xf32>
    %21 = vector.broadcast %20 : vector<1x1xf32> to vector<8x1xf32>
    %22 = arith.addf %19, %21 : vector<8x1xf32>
    %23 = arith.negf %22 : vector<8x1xf32>
    %24 = math.exp %23 : vector<8x1xf32>
    %cst_17 = arith.constant 1.000000e+00 : f32
    %25 = vector.broadcast %cst_17 : f32 to vector<8x1xf32>
    %26 = arith.addf %25, %24 : vector<8x1xf32>
    %27 = arith.divf %25, %26 : vector<8x1xf32>
    %c0_18 = arith.constant 0 : index
    %c0_19 = arith.constant 0 : index
    %28 = vector.load %arg8[%c0_18, %c0_19] : memref<8x1xf32, #tpu.memory_space<vmem>>, vector<8x1xf32>
    tpu.vector_store %arg8[%c0_18, %c0_19], %27 {strides = array<i32>} : memref<8x1xf32, #tpu.memory_space<vmem>>, vector<8x1xf32>,
    return
  }
  func.func @transform_0(%arg0: i32) -> (i32, i32) {
    %c0_i32 = arith.constant 0 : i32
    %c0_i32_0 = arith.constant 0 : i32
    return %arg0, %c0_i32 : i32, i32
  }
  func.func @transform_1(%arg0: i32) -> (i32, i32) {
    %c0_i32 = arith.constant 0 : i32
    %c0_i32_0 = arith.constant 0 : i32
    %c0_i32_1 = arith.constant 0 : i32
    return %c0_i32, %c0_i32_0 : i32, i32
  }
  func.func @transform_2(%arg0: i32) -> (i32, i32) {
    %c0_i32 = arith.constant 0 : i32
    %c0_i32_0 = arith.constant 0 : i32
    %c0_i32_1 = arith.constant 0 : i32
    return %c0_i32, %c0_i32_0 : i32, i32
  }
  func.func @transform_3(%arg0: i32) -> (i32, i32) {
    %c0_i32 = arith.constant 0 : i32
    %c0_i32_0 = arith.constant 0 : i32
    %c0_i32_1 = arith.constant 0 : i32
    return %c0_i32, %c0_i32_0 : i32, i32
  }
  func.func @transform_4(%arg0: i32) -> (i32, i32) {
    %c0_i32 = arith.constant 0 : i32
    %c0_i32_0 = arith.constant 0 : i32
    %c0_i32_1 = arith.constant 0 : i32
    return %c0_i32, %c0_i32_0 : i32, i32
  }
  func.func @transform_5(%arg0: i32) -> (i32, i32) {
    %c0_i32 = arith.constant 0 : i32
    %c0_i32_0 = arith.constant 0 : i32
    %c0_i32_1 = arith.constant 0 : i32
    return %c0_i32, %c0_i32_0 : i32, i32
  }
  func.func @transform_6(%arg0: i32) -> (i32, i32) {
    %c0_i32 = arith.constant 0 : i32
    %c0_i32_0 = arith.constant 0 : i32
    %c0_i32_1 = arith.constant 0 : i32
    return %c0_i32, %c0_i32_0 : i32, i32
  }
  func.func @transform_7(%arg0: i32) -> (i32, i32) {
    %c0_i32 = arith.constant 0 : i32
    %c0_i32_0 = arith.constant 0 : i32
    return %arg0, %c0_i32 : i32, i32
  }
}

</mosaic_0001>

<bundles_post_ra>
// kernel: tpu_custom_call.1
= control target key start
LH: loop header
LB: loop body
LE: loop exit
PB: predicated region body
PF: predicated region fallthrough
CT: control target
= control target key end

     0   :  { %v405_v0 = vmov 0.0   ;;  %vm406_vm0 = vmmov 0   ;;  %vm54_vm1 = vcmask 261120   ;;  %vm252_vm2 = vcmask 523264   ;;  %s507_s1 = inlined_call_operand.vmem [shape: bf16[32,128], index: 1, kind: input, shape index: {}]   ;;  %s508_s0 = inlined_call_operand.vmem [shape: f32[8,32], index: 0, kind: input, shape index: {}]   ;;  %s509_s3 = inlined_call_operand.vmem [shape: bf16[128,64], index: 3, kind: input, shape index: {}]   ;;  %s510_s5 = inlined_call_operand.vmem [shape: bf16[64,1], index: 5, kind: input, shape index: {}]   ;;  %s511_s2 = inlined_call_operand.vmem [shape: f32[1,128], index: 2, kind: input, shape index: {}]   ;;  %s512_s6 = inlined_call_operand.<no memory space> [shape: f32[1,1], index: 6, kind: input, shape index: {}]   ;;  %s513_s4 = inlined_call_operand.vmem [shape: f32[1,64], index: 4, kind: input, shape index: {}]   ;;  %s514_s7 = inlined_call_operand.vmem [shape: f32[8,1], index: 7, kind: output, shape index: {}]  }
   0x1   :  { %345 = vmatprep.subr.bf16.mxu0 %v405_v0  ;;  %v387_v1 = vld [vmem:[%s507_s1] sm:$0xff]   ;;  %349 = vmatprep.mubr.msk.bf16.mxu0 %vm406_vm0, %v405_v0  ;;  %v388_v2 = vld [vmem:[%s507_s1 + $0x8] sm:$0xff]   ;;  %v391_v7 = vld [vmem:[%s509_s3 + $0x10] sm:$0xff]   ;;  %v12_v25 = vstv %s512_s6  ;;  %vm302_vm3 = vcmask 7168  }
   0x2   :  { %353 = vmatprep.subr.bf16.mxu1 %v405_v0  ;;  %369 = vmatprep.mubr.msk.bf16.mxu1 %vm406_vm0, %v405_v0  ;;  %v29_v3 = vld [vmem:[%s508_s0] sm:$0xff]  ;;  %v390_v6 = vld [vmem:[%s509_s3 + $0x8] sm:$0xff]   ;;  %v392_v8 = vld [vmem:[%s509_s3 + $0x18] sm:$0xff]   ;;  %13 = vst [vmem:[#allocation2] sm:$0x1] %v12_v25 }
   0x3   :  { %346 = vmatpush3.bf16.msra.mxu0 %v387_v1  ;;  %v389_v4 = vld [vmem:[%s509_s3] sm:$0xff]   ;;  %v30_v5 = vpack.c.bf16 %v29_v3, %v29_v3  ;;  %v394_v10 = vld [vmem:[%s509_s3 + $0x28] sm:$0xff]   ;;  %v395_v11 = vld [vmem:[%s509_s3 + $0x30] sm:$0xff]  }
   0x4   :  { %347 = vmatprep.subr.bf16.mxu0 %v405_v0  ;;  %354 = vmatpush3.bf16.msra.mxu1 %v389_v4  ;;  %v393_v9 = vld [vmem:[%s509_s3 + $0x20] sm:$0xff]   ;;  %v396_v12 = vld [vmem:[%s509_s3 + $0x38] sm:$0xff]   ;;  %v398_v14 = vld [vmem:[%s510_s5 + $0x8] sm:$0xff]  }
   0x5   :  { %355 = vmatprep.subr.bf16.mxu1 %v405_v0  ;;  %v397_v13 = vld [vmem:[%s510_s5] sm:$0xff]   ;;  %v399_v23 = vld [vmem:[%s510_s5 + $0x10] sm:$0xff]   ;;  %v400_v24 = vld [vmem:[%s510_s5 + $0x18] sm:$0xff]  }
   0x6   :  { %v308_v15 = vld [vmem:[%s511_s2] ss:$0 sm:$0xff] }
   0x7   :  { %348 = vmatpush3.bf16.msra.mxu0 %v388_v2  ;;  %v312_v26 = vld [vmem:[%s513_s4] ss:$0 sm:$0xff] }
   0x8   :  { %373 = vmatprep.subr.bf16.mxu0 %v405_v0  ;;  %356 = vmatpush3.bf16.msra.mxu1 %v390_v6 }
   0x9   :  { %357 = vmatprep.subr.bf16.mxu1 %v405_v0  ;;  %v321_v34 = vld [vmem:[#allocation2] ss:$0 sm:$0xff] }
   0xa   :  { %350 = vmatmul.mubr.msk.bf16.vlgmr.msra.gmra.mrb[0].mxu0 %vm54_vm1, %v30_v5 }
   0xb   :  { %381 = vmatprep.mubr.msk.bf16.mxu0 %vm406_vm0, %v405_v0  ;;  %374 = vmatpush3.bf16.msra.mxu0 %v397_v13 }
   0xc   :  { %358 = vmatpush3.bf16.msra.mxu1 %v391_v7  ;;  %375 = vmatprep.subr.bf16.mxu0 %v405_v0 }
   0xd   :  { %359 = vmatprep.subr.bf16.mxu1 %v405_v0 }
   0xf   :  { %376 = vmatpush3.bf16.msra.mxu0 %v398_v14 }
  0x10   :  { %360 = vmatpush3.bf16.msra.mxu1 %v392_v8  ;;  %377 = vmatprep.subr.bf16.mxu0 %v405_v0 }
  0x11   :  { %361 = vmatprep.subr.bf16.mxu1 %v405_v0 }
  0x13   :  { %378 = vmatpush3.bf16.msra.mxu0 %v399_v23 }
  0x14   :  { %362 = vmatpush3.bf16.msra.mxu1 %v393_v9  ;;  %379 = vmatprep.subr.bf16.mxu0 %v405_v0 }
  0x15   :  { %363 = vmatprep.subr.bf16.mxu1 %v405_v0 }
  0x17   :  { %380 = vmatpush3.bf16.msra.mxu0 %v400_v24 }
  0x18   :  { %364 = vmatpush3.bf16.msra.mxu1 %v394_v10 }
  0x19   :  { %365 = vmatprep.subr.bf16.mxu1 %v405_v0 }
  0x1c   :  { %366 = vmatpush3.bf16.msra.mxu1 %v395_v11 }
  0x1d   :  { %367 = vmatprep.subr.bf16.mxu1 %v405_v0 }
  0x20   :  { %368 = vmatpush3.bf16.msra.mxu1 %v396_v12 }
  0xdd   :  { %v92_v16 = vpop.f32.mrb[0].mxu0 }
  0xde   :  { %v93_v17 = vadd.f32 %v308_v15, %v92_v16  ;;  %v351_v18 = vpop.f32.mrb[1].mxu0 }
  0xdf   :  { %v95_v19 = vpop.f32.mrb[2].mxu0 }
  0xe0   :  { %v98_v20 = vmax.f32 %v93_v17, 0.0  ;;  %v352_v21 = vpop.f32.mrb[3].mxu0 }
  0xe2   :  { %v99_v22 = vpack.c.bf16 %v98_v20, %v98_v20 }
  0xe4   :  { %370 = vmatmul.mubr.bf16.vlgmr.msra.gmra.mrb[0].mxu1 %v99_v22 }
 0x1b7   :  { %v205_v27 = vpop.f32.mrb[0].mxu1 }
 0x1b8   :  { %v206_v28 = vadd.f32 %v312_v26, %v205_v27  ;;  %v371_v29 = vpop.f32.mrb[1].mxu1 }
 0x1b9   :  { %v208_v30 = vpop.f32.mrb[2].mxu1 }
 0x1ba   :  { %v211_v31 = vmax.f32 %v206_v28, 0.0  ;;  %v372_v32 = vpop.f32.mrb[3].mxu1 }
 0x1bc   :  { %v212_v33 = vpack.c.bf16 %v211_v31, %v211_v31 }
 0x1be   :  { %382 = vmatmul.mubr.msk.bf16.vlgmr.msra.gmra.mrb[4].mxu0 %vm252_vm2, %v212_v33 }
 0x291   :  { %v290_v35 = vpop.f32.mrb[4].mxu0 }
 0x292   :  { %v291_v36 = vadd.f32 %v321_v34, %v290_v35  ;;  %v383_v37 = vpop.f32.mrb[5].mxu0 }
 0x293   :  { %v293_v38 = vpop.f32.mrb[6].mxu0 }
 0x294   :  { %v327_v39 = vmul.f32 -1.442695, %v291_v36  ;;  %v384_v40 = vpop.f32.mrb[7].mxu0 }
 0x296   :  { %401 = vpow2.f32 %v327_v39 }
 0x2a0   :  { %v402_v41 = vpop.eup %401 }
 0x2a1   :  { %v299_v42 = vadd.f32 1.0, %v402_v41 }
 0x2a3   :  { %403 = vrcp.f32 %v299_v42 }
 0x2ad   :  { %v404_v43 = vpop.eup %403 }
 0x2ae   :  { %303 = vst.msk [vmem:[%s514_s7] sm:$0xff] %vm302_vm3, %v404_v43 }

</bundles_post_ra>
